<compile_context>
chip_gen: v7x
topology: tpu7x:2x2x1
jax: 0.10.0
libtpu: 0.0.40
codegen_flags: <defaults>
</compile_context>

<pallas_src>
import functools

import jax
import jax.numpy as jnp
from jax.experimental import pallas as pl
from jax.experimental.pallas import tpu as pltpu

LEAKY_SLOPE = 0.01              # F.leaky_relu default
BN_EPS = 1e-5                   # nn.BatchNorm2d default
VMEM_LIMIT = 32 * 1024 * 1024   # safe on v5e/v6e (128 MiB) and v7x (64 MiB)


def _round_up(x, m):
    return (x + m - 1) // m * m


def _conv_tile(x_ref, w_ref, *, orows, W, C_in, KH, KW):
    """Convolution for one image tile as a single MXU matmul.

    x_ref : [1, C_in, cols] bf16 -- channel-major image, spatial flattened on lanes,
            zero-padded so every shifted slice stays in bounds.
    w_ref : [C_out, KH*KW*C_in] bf16 -- tap-major, channel-minor.

    Returns [C_out, orows] f32 where column r = oh*W + w; only w < OW and
    r < OH*W are valid conv outputs (the rest is wrap-around garbage that the
    stats mask and the wrapper slice away).
    """
    xv = x_ref[0]                                   # [C_in, cols] bf16 (no f32 upcast)
    taps = []
    for ki in range(KH):
        for kj in range(KW):
            off = ki * W + kj                       # static lane offset
            taps.append(jax.lax.slice(xv, (0, off), (C_in, off + orows)))
    patches = jnp.concatenate(taps, axis=0)         # [KH*KW*C_in, orows] bf16
    return jnp.dot(w_ref[...], patches, preferred_element_type=jnp.float32)


def _stats_kernel(x_ref, w_ref, gamma_ref, beta_ref,
                  conv_ref, a_ref, b_ref, sum_sc, ssq_sc,
                  *, orows, W, OW, OH, C_in, C_out, KH, KW, n_valid):
    """Pass 1: conv per image, cache it, accumulate global per-channel statistics,
    emit folded BatchNorm scale/shift on the last grid step."""
    n = pl.program_id(0)

    @pl.when(n == 0)
    def _():
        sum_sc[...] = jnp.zeros_like(sum_sc)
        ssq_sc[...] = jnp.zeros_like(ssq_sc)

    acc = _conv_tile(x_ref, w_ref, orows=orows, W=W, C_in=C_in, KH=KH, KW=KW)

    # Mask wrap-around / padded columns so stats cover exactly N*OH*OW pixels.
    r = jax.lax.broadcasted_iota(jnp.int32, (1, orows), 1)
    valid = ((r % W) < OW) & (r < OH * W)
    accv = jnp.where(valid, acc, 0.0)

    conv_ref[0] = accv.astype(conv_ref.dtype)       # cache conv for pass 2

    sum_sc[...] += jnp.sum(accv, axis=1, keepdims=True)
    ssq_sc[...] += jnp.sum(accv * accv, axis=1, keepdims=True)

    @pl.when(n == pl.num_programs(0) - 1)
    def _():
        inv_n = 1.0 / n_valid
        mean = sum_sc[...] * inv_n
        var = ssq_sc[...] * inv_n - mean * mean     # biased var (PyTorch BN training)
        a = gamma_ref[...] * jax.lax.rsqrt(var + BN_EPS)
        a_ref[...] = a
        b_ref[...] = beta_ref[...] - mean * a


def _apply_kernel(conv_ref, a_ref, b_ref, mask_ref, out_ref):
    """Pass 2: pure elementwise folded-BN + leaky_relu + Dropout2d per image."""
    y = conv_ref[0].astype(jnp.float32)             # [C_out, orows]
    y = y * a_ref[...] + b_ref[...]                 # folded BatchNorm
    y = jnp.where(y >= 0, y, LEAKY_SLOPE * y)       # leaky_relu
    out_ref[0] = (y * mask_ref[0]).astype(out_ref.dtype)   # Dropout2d (per-channel mask)


def deepsearch_conv_forward(x_nchw, weight, bias, gamma, beta, drop_mask_nc,
                            *, kernel_size):
    """Forward pass of DeepSearchConv.

    `bias` is accepted for interface parity but is mathematically a no-op: a
    per-channel constant added before training-mode BatchNorm cancels exactly
    under the batch-mean subtraction, so it is folded away.
    """
    del bias
    N, C_in, H, W = x_nchw.shape
    C_out = weight.shape[0]
    KH = KW = kernel_size
    OH, OW = H - KH + 1, W - KW + 1

    orows = _round_up(OH * W, 128)                  # lane-dense output width / image
    cols = _round_up(max(H * W, (KH - 1) * W + (KW - 1) + orows), 128)

    # ---- glue: pure layout work (channel-major slabs, no NHWC transpose, no im2col) ----
    x3d = x_nchw.reshape(N, C_in, H * W)
    x3d = jnp.pad(x3d, ((0, 0), (0, 0), (0, cols - H * W))).astype(jnp.bfloat16)

    # weight [C_out, C_in, KH, KW] -> [C_out, KH*KW*C_in] (tap-major, channel-minor)
    w2 = jnp.transpose(weight, (0, 2, 3, 1)).reshape(C_out, KH * KW * C_in)
    w2 = w2.astype(jnp.bfloat16)

    g_col = gamma.reshape(C_out, 1).astype(jnp.float32)
    be_col = beta.reshape(C_out, 1).astype(jnp.float32)
    mask3d = drop_mask_nc.reshape(N, C_out, 1).astype(jnp.float32)   # pre-scaled keep mask

    x_spec = pl.BlockSpec((1, C_in, cols), lambda n: (n, 0, 0))
    w_spec = pl.BlockSpec((C_out, KH * KW * C_in), lambda n: (0, 0))
    col_spec = pl.BlockSpec((C_out, 1), lambda n: (0, 0))
    img_spec = pl.BlockSpec((1, C_out, orows), lambda n: (n, 0, 0))
    mask_spec = pl.BlockSpec((1, C_out, 1), lambda n: (n, 0, 0))

    conv_flops = 2 * N * C_out * (KH * KW * C_in) * orows
    stats_bytes = (x3d.size * 2 + w2.size * 2 + 4 * C_out * 4
                   + N * C_out * orows * 2)

    # ---- pass 1: conv + global BatchNorm statistics -> cached conv, folded scale/shift ----
    stats_call = pl.pallas_call(
        functools.partial(_stats_kernel, orows=orows, W=W, OW=OW, OH=OH,
                          C_in=C_in, C_out=C_out, KH=KH, KW=KW,
                          n_valid=float(N * OH * OW)),
        out_shape=(jax.ShapeDtypeStruct((N, C_out, orows), jnp.bfloat16),
                   jax.ShapeDtypeStruct((C_out, 1), jnp.float32),
                   jax.ShapeDtypeStruct((C_out, 1), jnp.float32)),
        grid=(N,),
        in_specs=[x_spec, w_spec, col_spec, col_spec],
        out_specs=(img_spec, col_spec, col_spec),
        scratch_shapes=[pltpu.VMEM((C_out, 1), jnp.float32),
                        pltpu.VMEM((C_out, 1), jnp.float32)],
        compiler_params=pltpu.CompilerParams(
            dimension_semantics=("arbitrary",),
            vmem_limit_bytes=VMEM_LIMIT),
        cost_estimate=pl.CostEstimate(flops=conv_flops, transcendentals=0,
                                      bytes_accessed=stats_bytes),
    )
    conv_cache, a_scale, b_shift = stats_call(x3d, w2, g_col, be_col)

    # ---- pass 2: elementwise BN + leaky_relu + dropout, image-parallel ----
    apply_bytes = (N * C_out * orows * 2 + 2 * C_out * 4 + N * C_out * 4
                   + N * C_out * orows * x_nchw.dtype.itemsize)
    apply_call = pl.pallas_call(
        _apply_kernel,
        out_shape=jax.ShapeDtypeStruct((N, C_out, orows), x_nchw.dtype),
        grid=(N,),
        in_specs=[img_spec, col_spec, col_spec, mask_spec],
        out_specs=img_spec,
        compiler_params=pltpu.CompilerParams(
            dimension_semantics=("parallel",),
            vmem_limit_bytes=VMEM_LIMIT),
        cost_estimate=pl.CostEstimate(flops=4 * N * C_out * orows,
                                      transcendentals=0,
                                      bytes_accessed=apply_bytes),
    )
    out3d = apply_call(conv_cache, a_scale, b_shift, mask3d)

    # [N, C_out, orows] is already NCHW once padded / wrap-around columns are dropped.
    out = out3d[:, :, :OH * W].reshape(N, C_out, OH, W)[:, :, :, :OW]
    return out


def _reference_forward(x, weight, bias, gamma, beta, drop_mask_nc):
    """Pure-JAX reference of the PyTorch module (training mode)."""
    N, _, _, _ = x.shape
    C_out = weight.shape[0]
    y = jax.lax.conv_general_dilated(x, weight, (1, 1), "VALID",
                                     dimension_numbers=("NCHW", "OIHW", "NCHW"))
    y = y + bias.reshape(1, C_out, 1, 1)
    mean = jnp.mean(y, axis=(0, 2, 3), keepdims=True)
    var = jnp.mean((y - mean) ** 2, axis=(0, 2, 3), keepdims=True)   # biased var
    y = (y - mean) * jax.lax.rsqrt(var + BN_EPS)
    y = y * gamma.reshape(1, C_out, 1, 1) + beta.reshape(1, C_out, 1, 1)
    y = jnp.where(y >= 0, y, LEAKY_SLOPE * y)
    return y * drop_mask_nc.reshape(N, C_out, 1, 1)


if __name__ == "__main__":
    # Small shapes consistent with the module: Conv2d(4 -> 8, kernel_size=3)
    N, C_in, H, W = 2, 4, 16, 16
    C_out, K = 8, 3

    key = jax.random.PRNGKey(0)
    k_x, k_w, k_b, k_d = jax.random.split(key, 4)

    x = jax.random.normal(k_x, (N, C_in, H, W), jnp.float32)

    # Deterministic parameter init (PyTorch-style uniform(-1/sqrt(fan_in), ..)).
    fan_in = C_in * K * K
    bound = 1.0 / (fan_in ** 0.5)
    weight = jax.random.uniform(k_w, (C_out, C_in, K, K), jnp.float32, -bound, bound)
    bias = jax.random.uniform(k_b, (C_out,), jnp.float32, -bound, bound)
    gamma = jnp.ones((C_out,), jnp.float32)   # BatchNorm2d default affine init
    beta = jnp.zeros((C_out,), jnp.float32)

    # Dropout2d(0.5), training mode: zero whole (sample, channel) maps and scale
    # survivors by 1/(1-p) = 2.  Mask drawn deterministically here (torch RNG
    # cannot be reproduced; the mask is an explicit input).
    keep = jax.random.bernoulli(k_d, 0.5, (N, C_out)).astype(jnp.float32)
    drop_mask = keep * 2.0

    out = deepsearch_conv_forward(x, weight, bias, gamma, beta, drop_mask,
                                  kernel_size=K)
    out = jax.block_until_ready(out)

    assert out.shape == (N, C_out, H - K + 1, W - K + 1), out.shape
    assert bool(jnp.all(jnp.isfinite(out)))

    ref = _reference_forward(x, weight, bias, gamma, beta, drop_mask)
    max_err = float(jnp.max(jnp.abs(out - ref)))
    assert max_err < 0.1, f"max abs error vs reference too large: {max_err}"

    print("KERNEL_OK")
</pallas_src>

<mosaic_0001>
module attributes {stable_mosaic.version = 11 : i64} {
  func.func @_stats_kernel(%arg0: i32, %arg1: memref<1x4x384xbf16, #tpu.memory_space<vmem>>, %arg2: memref<8x36xbf16, #tpu.memory_space<vmem>>, %arg3: memref<8x1xf32, #tpu.memory_space<vmem>>, %arg4: memref<8x1xf32, #tpu.memory_space<vmem>>, %arg5: memref<1x8x256xbf16, #tpu.memory_space<vmem>>, %arg6: memref<8x1xf32, #tpu.memory_space<vmem>>, %arg7: memref<8x1xf32, #tpu.memory_space<vmem>>, %arg8: memref<8x1xf32, #tpu.memory_space<vmem>>, %arg9: memref<8x1xf32, #tpu.memory_space<vmem>>) attributes {dimension_semantics = [#tpu.dimension_semantics<arbitrary>], iteration_bounds = array<i64: 2>, scalar_prefetch = 0 : i64, scratch_operands = 2 : i64, tpu.core_type = #tpu.core_type<tc>, window_params = [{transform_indices = @transform_0, window_bounds = array<i64: 1, 4, 384>}, {pipeline_mode = #tpu.pipeline_mode<synchronous>, transform_indices = @transform_1, window_bounds = array<i64: 8, 36>}, {pipeline_mode = #tpu.pipeline_mode<synchronous>, transform_indices = @transform_2, window_bounds = array<i64: 8, 1>}, {pipeline_mode = #tpu.pipeline_mode<synchronous>, transform_indices = @transform_3, window_bounds = array<i64: 8, 1>}, {transform_indices = @transform_4, window_bounds = array<i64: 1, 8, 256>}, {pipeline_mode = #tpu.pipeline_mode<synchronous>, transform_indices = @transform_5, window_bounds = array<i64: 8, 1>}, {pipeline_mode = #tpu.pipeline_mode<synchronous>, transform_indices = @transform_6, window_bounds = array<i64: 8, 1>}]} {
    %c0_i32 = arith.constant 0 : i32
    %0 = arith.cmpi eq, %arg0, %c0_i32 : i32
    %1 = arith.extui %0 : i1 to i32
    %c0_i32_0 = arith.constant 0 : i32
    %2 = arith.cmpi ne, %1, %c0_i32_0 : i32
    scf.if %2 {
      %cst_25 = arith.constant 0.000000e+00 : f32
      %61 = vector.broadcast %cst_25 : f32 to vector<8x1xf32>
      %c0_26 = arith.constant 0 : index
      %c0_27 = arith.constant 0 : index
      %62 = vector.load %arg8[%c0_26, %c0_27] : memref<8x1xf32, #tpu.memory_space<vmem>>, vector<8x1xf32>
      tpu.vector_store %arg8[%c0_26, %c0_27], %61 {strides = array<i32>} : memref<8x1xf32, #tpu.memory_space<vmem>>, vector<8x1xf32>,
      %cst_28 = arith.constant 0.000000e+00 : f32
      %63 = vector.broadcast %cst_28 : f32 to vector<8x1xf32>
      %c0_29 = arith.constant 0 : index
      %c0_30 = arith.constant 0 : index
      %64 = vector.load %arg9[%c0_29, %c0_30] : memref<8x1xf32, #tpu.memory_space<vmem>>, vector<8x1xf32>
      tpu.vector_store %arg9[%c0_29, %c0_30], %63 {strides = array<i32>} : memref<8x1xf32, #tpu.memory_space<vmem>>, vector<8x1xf32>,
    } else {
    }
    %c0 = arith.constant 0 : index
    %c0_1 = arith.constant 0 : index
    %c0_2 = arith.constant 0 : index
    %3 = vector.load %arg1[%c0, %c0_1, %c0_2] : memref<1x4x384xbf16, #tpu.memory_space<vmem>>, vector<1x4x384xbf16>
    %4 = vector.shape_cast %3 : vector<1x4x384xbf16> to vector<4x384xbf16>
    %5 = vector.extract_strided_slice %4 {offsets = [0, 0], sizes = [4, 256], strides = [1, 1]} : vector<4x384xbf16> to vector<4x256xbf16>
    %6 = vector.extract_strided_slice %4 {offsets = [0, 1], sizes = [4, 256], strides = [1, 1]} : vector<4x384xbf16> to vector<4x256xbf16>
    %7 = vector.extract_strided_slice %4 {offsets = [0, 2], sizes = [4, 256], strides = [1, 1]} : vector<4x384xbf16> to vector<4x256xbf16>
    %8 = vector.extract_strided_slice %4 {offsets = [0, 16], sizes = [4, 256], strides = [1, 1]} : vector<4x384xbf16> to vector<4x256xbf16>
    %9 = vector.extract_strided_slice %4 {offsets = [0, 17], sizes = [4, 256], strides = [1, 1]} : vector<4x384xbf16> to vector<4x256xbf16>
    %10 = vector.extract_strided_slice %4 {offsets = [0, 18], sizes = [4, 256], strides = [1, 1]} : vector<4x384xbf16> to vector<4x256xbf16>
    %11 = vector.extract_strided_slice %4 {offsets = [0, 32], sizes = [4, 256], strides = [1, 1]} : vector<4x384xbf16> to vector<4x256xbf16>
    %12 = vector.extract_strided_slice %4 {offsets = [0, 33], sizes = [4, 256], strides = [1, 1]} : vector<4x384xbf16> to vector<4x256xbf16>
    %13 = vector.extract_strided_slice %4 {offsets = [0, 34], sizes = [4, 256], strides = [1, 1]} : vector<4x384xbf16> to vector<4x256xbf16>
    %14 = tpu.concatenate %5, %6, %7, %8, %9, %10, %11, %12, %13 in 0 : vector<4x256xbf16>, vector<4x256xbf16>, vector<4x256xbf16>, vector<4x256xbf16>, vector<4x256xbf16>, vector<4x256xbf16>, vector<4x256xbf16>, vector<4x256xbf16>, vector<4x256xbf16> -> vector<36x256xbf16>
    %c0_3 = arith.constant 0 : index
    %c0_4 = arith.constant 0 : index
    %15 = vector.load %arg2[%c0_3, %c0_4] : memref<8x36xbf16, #tpu.memory_space<vmem>>, vector<8x36xbf16>
    %cst = arith.constant dense<0.000000e+00> : vector<8x256xf32>
    %16 = tpu.matmul %15, %14, %cst {dimension_numbers = #tpu.dot_dimension_numbers<[1], [0], [0], [1], [0, 0, 1, 1], [], []>} : vector<8x36xbf16>, vector<36x256xbf16>, vector<8x256xf32> -> vector<8x256xf32>
    %17 = tpu.iota {dimensions = array<i32: 1>} : vector<1x256xi32>
    %c16_i32 = arith.constant 16 : i32
    %c0_i32_5 = arith.constant 0 : i32
    %18 = arith.cmpi eq, %c16_i32, %c0_i32_5 : i32
    %c1_i32 = arith.constant 1 : i32
    %19 = arith.select %18, %c1_i32, %c16_i32 : i32
    %20 = vector.broadcast %19 : i32 to vector<1x256xi32>
    %21 = arith.remsi %17, %20 : vector<1x256xi32>
    %c0_i32_6 = arith.constant 0 : i32
    %22 = vector.broadcast %c0_i32_6 : i32 to vector<1x256xi32>
    %23 = arith.cmpi ne, %21, %22 : vector<1x256xi32>
    %c0_i32_7 = arith.constant 0 : i32
    %24 = vector.broadcast %c0_i32_7 : i32 to vector<1x256xi32>
    %25 = arith.cmpi slt, %21, %24 : vector<1x256xi32>
    %c0_i32_8 = arith.constant 0 : i32
    %26 = arith.cmpi slt, %19, %c0_i32_8 : i32
    %27 = vector.broadcast %26 : i1 to vector<1x256xi1>
    %28 = vector.broadcast %27 : vector<1x256xi1> to vector<1x256xi1>
    %29 = arith.xori %25, %28 : vector<1x256xi1>
    %30 = arith.andi %29, %23 : vector<1x256xi1>
    %31 = vector.broadcast %19 : i32 to vector<1x256xi32>
    %32 = arith.addi %21, %31 : vector<1x256xi32>
    %33 = arith.select %30, %32, %21 : vector<1x256xi1>, vector<1x256xi32>
    %c14_i32 = arith.constant 14 : i32
    %34 = vector.broadcast %c14_i32 : i32 to vector<1x256xi32>
    %35 = arith.cmpi slt, %33, %34 : vector<1x256xi32>
    %c224_i32 = arith.constant 224 : i32
    %36 = vector.broadcast %c224_i32 : i32 to vector<1x256xi32>
    %37 = arith.cmpi slt, %17, %36 : vector<1x256xi32>
    %38 = arith.andi %35, %37 : vector<1x256xi1>
    %cst_9 = arith.constant 0.000000e+00 : f32
    %39 = vector.shape_cast %38 : vector<1x256xi1> to vector<1x256xi1>
    %40 = vector.broadcast %39 : vector<1x256xi1> to vector<8x256xi1>
    %41 = vector.broadcast %cst_9 : f32 to vector<8x256xf32>
    %42 = arith.select %40, %16, %41 : vector<8x256xi1>, vector<8x256xf32>
    %43 = arith.truncf %42 : vector<8x256xf32> to vector<8x256xbf16>
    %c0_10 = arith.constant 0 : index
    %c0_11 = arith.constant 0 : index
    %c0_12 = arith.constant 0 : index
    %44 = vector.load %arg5[%c0_10, %c0_11, %c0_12] : memref<1x8x256xbf16, #tpu.memory_space<vmem>>, vector<1x8x256xbf16>
    %45 = vector.shape_cast %44 : vector<1x8x256xbf16> to vector<8x256xbf16>
    %46 = vector.shape_cast %43 : vector<8x256xbf16> to vector<1x8x256xbf16>
    tpu.vector_store %arg5[%c0_10, %c0_11, %c0_12], %46 {strides = array<i32>} : memref<1x8x256xbf16, #tpu.memory_space<vmem>>, vector<1x8x256xbf16>,
    %c0_13 = arith.constant 0 : index
    %c0_14 = arith.constant 0 : index
    %47 = vector.load %arg8[%c0_13, %c0_14] : memref<8x1xf32, #tpu.memory_space<vmem>>, vector<8x1xf32>
    %cst_15 = arith.constant dense<0.000000e+00> : vector<8xf32>
    %48 = vector.multi_reduction <add>, %42, %cst_15 [1] : vector<8x256xf32> to vector<8xf32>
    %49 = vector.shape_cast %48 : vector<8xf32> to vector<8x1xf32>
    %50 = arith.addf %47, %49 : vector<8x1xf32>
    %c0_16 = arith.constant 0 : index
    %c0_17 = arith.constant 0 : index
    %51 = vector.load %arg8[%c0_16, %c0_17] : memref<8x1xf32, #tpu.memory_space<vmem>>, vector<8x1xf32>
    tpu.vector_store %arg8[%c0_16, %c0_17], %50 {strides = array<i32>} : memref<8x1xf32, #tpu.memory_space<vmem>>, vector<8x1xf32>,
    %c0_18 = arith.constant 0 : index
    %c0_19 = arith.constant 0 : index
    %52 = vector.load %arg9[%c0_18, %c0_19] : memref<8x1xf32, #tpu.memory_space<vmem>>, vector<8x1xf32>
    %53 = arith.mulf %42, %42 : vector<8x256xf32>
    %cst_20 = arith.constant dense<0.000000e+00> : vector<8xf32>
    %54 = vector.multi_reduction <add>, %53, %cst_20 [1] : vector<8x256xf32> to vector<8xf32>
    %55 = vector.shape_cast %54 : vector<8xf32> to vector<8x1xf32>
    %56 = arith.addf %52, %55 : vector<8x1xf32>
    %c0_21 = arith.constant 0 : index
    %c0_22 = arith.constant 0 : index
    %57 = vector.load %arg9[%c0_21, %c0_22] : memref<8x1xf32, #tpu.memory_space<vmem>>, vector<8x1xf32>
    tpu.vector_store %arg9[%c0_21, %c0_22], %56 {strides = array<i32>} : memref<8x1xf32, #tpu.memory_space<vmem>>, vector<8x1xf32>,
    %c1_i32_23 = arith.constant 1 : i32
    %58 = arith.cmpi eq, %arg0, %c1_i32_23 : i32
    %59 = arith.extui %58 : i1 to i32
    %c0_i32_24 = arith.constant 0 : i32
    %60 = arith.cmpi ne, %59, %c0_i32_24 : i32
    scf.if %60 {
      %c0_25 = arith.constant 0 : index
      %c0_26 = arith.constant 0 : index
      %61 = vector.load %arg8[%c0_25, %c0_26] : memref<8x1xf32, #tpu.memory_space<vmem>>, vector<8x1xf32>
      %cst_27 = arith.constant 0.00255102036 : f32
      %62 = vector.broadcast %cst_27 : f32 to vector<8x1xf32>
      %63 = arith.mulf %61, %62 : vector<8x1xf32>
      %c0_28 = arith.constant 0 : index
      %c0_29 = arith.constant 0 : index
      %64 = vector.load %arg9[%c0_28, %c0_29] : memref<8x1xf32, #tpu.memory_space<vmem>>, vector<8x1xf32>
      %cst_30 = arith.constant 0.00255102036 : f32
      %65 = vector.broadcast %cst_30 : f32 to vector<8x1xf32>
      %66 = arith.mulf %64, %65 : vector<8x1xf32>
      %67 = arith.mulf %63, %63 : vector<8x1xf32>
      %68 = arith.subf %66, %67 : vector<8x1xf32>
      %c0_31 = arith.constant 0 : index
      %c0_32 = arith.constant 0 : index
      %69 = vector.load %arg3[%c0_31, %c0_32] : memref<8x1xf32, #tpu.memory_space<vmem>>, vector<8x1xf32>
      %cst_33 = arith.constant 9.99999974E-6 : f32
      %70 = vector.broadcast %cst_33 : f32 to vector<8x1xf32>
      %71 = arith.addf %68, %70 : vector<8x1xf32>
      %72 = math.rsqrt %71 : vector<8x1xf32>
      %73 = arith.mulf %69, %72 : vector<8x1xf32>
      %c0_34 = arith.constant 0 : index
      %c0_35 = arith.constant 0 : index
      %74 = vector.load %arg6[%c0_34, %c0_35] : memref<8x1xf32, #tpu.memory_space<vmem>>, vector<8x1xf32>
      tpu.vector_store %arg6[%c0_34, %c0_35], %73 {strides = array<i32>} : memref<8x1xf32, #tpu.memory_space<vmem>>, vector<8x1xf32>,
      %c0_36 = arith.constant 0 : index
      %c0_37 = arith.constant 0 : index
      %75 = vector.load %arg4[%c0_36, %c0_37] : memref<8x1xf32, #tpu.memory_space<vmem>>, vector<8x1xf32>
      %76 = arith.mulf %63, %73 : vector<8x1xf32>
      %77 = arith.subf %75, %76 : vector<8x1xf32>
      %c0_38 = arith.constant 0 : index
      %c0_39 = arith.constant 0 : index
      %78 = vector.load %arg7[%c0_38, %c0_39] : memref<8x1xf32, #tpu.memory_space<vmem>>, vector<8x1xf32>
      tpu.vector_store %arg7[%c0_38, %c0_39], %77 {strides = array<i32>} : memref<8x1xf32, #tpu.memory_space<vmem>>, vector<8x1xf32>,
    } else {
    }
    return
  }
  func.func @transform_0(%arg0: i32) -> (i32, i32, i32) {
    %c0_i32 = arith.constant 0 : i32
    %c0_i32_0 = arith.constant 0 : i32
    %c0_i32_1 = arith.constant 0 : i32
    return %arg0, %c0_i32, %c0_i32_0 : i32, i32, i32
  }
  func.func @transform_1(%arg0: i32) -> (i32, i32) {
    %c0_i32 = arith.constant 0 : i32
    %c0_i32_0 = arith.constant 0 : i32
    %c0_i32_1 = arith.constant 0 : i32
    return %c0_i32, %c0_i32_0 : i32, i32
  }
  func.func @transform_2(%arg0: i32) -> (i32, i32) {
    %c0_i32 = arith.constant 0 : i32
    %c0_i32_0 = arith.constant 0 : i32
    %c0_i32_1 = arith.constant 0 : i32
    return %c0_i32, %c0_i32_0 : i32, i32
  }
  func.func @transform_3(%arg0: i32) -> (i32, i32) {
    %c0_i32 = arith.constant 0 : i32
    %c0_i32_0 = arith.constant 0 : i32
    %c0_i32_1 = arith.constant 0 : i32
    return %c0_i32, %c0_i32_0 : i32, i32
  }
  func.func @transform_4(%arg0: i32) -> (i32, i32, i32) {
    %c0_i32 = arith.constant 0 : i32
    %c0_i32_0 = arith.constant 0 : i32
    %c0_i32_1 = arith.constant 0 : i32
    return %arg0, %c0_i32, %c0_i32_0 : i32, i32, i32
  }
  func.func @transform_5(%arg0: i32) -> (i32, i32) {
    %c0_i32 = arith.constant 0 : i32
    %c0_i32_0 = arith.constant 0 : i32
    %c0_i32_1 = arith.constant 0 : i32
    return %c0_i32, %c0_i32_0 : i32, i32
  }
  func.func @transform_6(%arg0: i32) -> (i32, i32) {
    %c0_i32 = arith.constant 0 : i32
    %c0_i32_0 = arith.constant 0 : i32
    %c0_i32_1 = arith.constant 0 : i32
    return %c0_i32, %c0_i32_0 : i32, i32
  }
}

</mosaic_0001>

<bundles_post_ra>
// kernel: tpu_custom_call.1
= control target key start
LH: loop header
LB: loop body
LE: loop exit
PB: predicated region body
PF: predicated region fallthrough
CT: control target
= control target key end

     0   :  { %12 = vsyncpa [#allocation5], 0  ;;  %s949_s0 = inlined_call_operand.vmem [shape: bf16[2,4,384], index: 0, kind: input, shape index: {}]   ;;  %s950_s1 = inlined_call_operand.vmem [shape: bf16[8,36], index: 1, kind: input, shape index: {}]   ;;  %s951_s2 = inlined_call_operand.vmem [shape: f32[8,1], index: 2, kind: input, shape index: {}]   ;;  %s952_s3 = inlined_call_operand.vmem [shape: f32[8,1], index: 3, kind: input, shape index: {}]   ;;  %s953_s4 = inlined_call_operand.hbm [shape: bf16[2,8,256], index: 4, kind: output, shape index: {0}]   ;;  %s954_s5 = inlined_call_operand.vmem [shape: f32[8,1], index: 5, kind: output, shape index: {1}]   ;;  %s955_s6 = inlined_call_operand.vmem [shape: f32[8,1], index: 6, kind: output, shape index: {2}]  }
   0x1   :  { %14 = vsyncpa [#allocation5 + $0x1], 0  ;;  %s794_s21 = smov 0   ;;  %s796_s22 = smov 0  }
   0x2   :  { %s798_s23 = smov 0   ;;  %s800_s24 = smov 0  }
   0x3 LB: > { %s815_s25 = sadd.s32 4294967295, %s745_s24   ;;  %s610_s26 = sadd.s32 4294967294, %s745_s24   ;;  %s745_s24 = sphi %s800_s24, %s961_s24   ;;  %s741_s23 = sphi %s798_s23, %s960_s23   ;;  %s737_s22 = sphi %s796_s22, %s959_s22   ;;  %s733_s21 = sphi %s794_s21, %s958_s21  }
   0x4   : > { %s819_s27 = sadd.s32 1, %s745_s24   ;;  %s116_s28 = sadd.s32 1, %s741_s23 }
   0x5   : > { %s113_s29 = ssub.s32 %s745_s24, %s819_s27  ;;  %p126_p0 = scmp.ne.s32.totalorder %s741_s23, %s737_s22 }
   0x6   : > { %p114_p1 = scmp.eq.s32.totalorder %s113_s29, 0  ;;  %p127_p2 = scmp.eq.s32.totalorder %s815_s25, 1 }
   0x7   : > { %p132_p3 = scmp.ne.s32.totalorder %s737_s22, %s733_s21  ;;  %p133_p4 = scmp.eq.s32.totalorder %s610_s26, 1 }
   0x8   : > { %s830_s30 = scalar_select %p114_p1, %s741_s23, %s116_s28  }
   0x9   : > { %p832_p5 = por %p127_p2, %p126_p0  ;;  %p836_p6 = por %p133_p4, %p132_p3 }
   0xa   : > { %p613_p7 = scmp.ge.s32.totalorder %s745_s24, 1  ;;  %p210_p8 = scmp.lt.s32.totalorder %s745_s24, 3 }
   0xc   : > { %p211_p9 = pnand %p613_p7, %p210_p8 }
   0xd   : > { %s233_s9 = sand.u32 (!%p211_p9), 1, %s737_s22   ;;  %p240_p10 = scmp.lt.s32.totalorder (!%p211_p9), %s815_s25, 1 }
   0xe   : > { %214 = sbr.rel (%p211_p9) target bundleno = 620 (0x26c), region = 36  ;;  %s846_s10 = sshll.u32 (!%p211_p9), %s233_s9, 3 }
   0xf   : > { %s235_s16 = scalar_lea.vmem (!%p211_p9), [#allocation4], %s846_s10  ;;  %p616_p11 = scmp.ne.s32.totalorder (!%p211_p9), %s815_s25, 0 }
  0x15   : > { %s241_s11 = scalar_select %p240_p10, %s815_s25, 1 }
  0x16   : > { %249 = sbr.rel (%p616_p11) target bundleno = 29 (0x1d), region = 40  ;;  %vm250_vm0 = vcmask (!%p616_p11), 7168   ;;  %v747_v0 = vmov (!%p616_p11), 0.0  }
  0x17   : > { %s628_s12 = smul.u32 6, %s241_s11  ;;  %251 = vst.msk [vmem:[#allocation2] sm:$0xff] (!%p616_p11), %vm250_vm0, %v747_v0  ;;  %252 = vst.msk [vmem:[#allocation3] sm:$0xff] (!%p616_p11), %vm250_vm0, %v747_v0 }
  0x19   : > { %s244_s15 = scalar_lea.vmem %s949_s0, %s628_s12 }
  0x1d PF: > { %v253_v1 = vld [vmem:[%s244_s15] sm:$0x3f]  ;;  %v258_v2 = vlaneseq  ;;  %v748_v3 = vmov 1983009808   ;;  %s749_s17 = smov 127   ;;  %s750_s18 = smov 126  }
  0x1e   : > { %v256_v4 = vunpack.c.l.s4 %v748_v3  ;;  %v263_v7 = vcombine.low %v253_v1, %v253_v1  ;;  %v281_v9 = vcombine.high %v253_v1, %v253_v1  ;;  %s751_s19 = smov 112   ;;  %s752_s20 = smov 111   ;;  %v755_v18 = vmov 0  }
  0x1f   : > { %v259_v5 = vshrl.u32 %v258_v2, 7  ;;  %s753_s26 = smov 110   ;;  %s754_s28 = smov 96   ;;  %433 = vmatprep.mubr.bf16.mxu0 %v755_v18  ;;  %vm278_vm1 = vcmask 1039360   ;;  %vm297_vm2 = vcmask 1031168   ;;  %vm355_vm3 = vcmask 1041408  }
  0x20   : > { %v257_v6 = vunpack.c.0.s8 %v256_v4  ;;  %s756_s29 = smov 95   ;;  %s757_s11 = smov 94   ;;  %vm307_vm4 = vcmask 916480   ;;  %vm362_vm5 = vcmask 1043456   ;;  %vm367_vm6 = vcmask 1045504  }
  0x21   : > { %vm325_vm7 = vcmask 900096   ;;  %vm334_vm8 = vcmask 785408   ;;  %vm316_vm9 = vcmask 908288   ;;  %vm343_vm10 = vcmask 777216   ;;  %p620_p12 = scmp.ne.s32.totalorder %s815_s25, 1 }
  0x22   : > { %v260_v8 = vsub.s32 %v257_v6, %v259_v5  ;;  %vm352_vm11 = vcmask 769024   ;;  %vm391_vm12 = vcmask 293888  }
  0x24   : > { %v270_v10 = vrot.slane %v263_v7, %v260_v8  ;;  %v855_v11 = vrot.slane %v253_v1, %v260_v8  ;;  %v288_v13 = vrot.slane %v281_v9, %v260_v8  ;;  %v390_v9 = vld [vmem:[%s950_s1] sm:$0xf] }
  0x26   : > { %272 = vrot.lane.b32.xlu1 %v270_v10, %s749_s17  ;;  %276 = vrot.lane.b32.xlu0 %v855_v11, %s749_s17  ;;  %v271_v12 = vcombine.high %v270_v10, %v270_v10  ;;  %v290_v14 = vcombine.low %v288_v13, %v288_v13  ;;  %v289_v15 = vcombine.low %v855_v11, %v855_v11 }
  0x27   : > { %v300_v16 = vcombine.low %v270_v10, %v270_v10  ;;  %v262_v17 = vcombine.high %v855_v11, %v855_v11 }
  0x2a   : > { %293 = vrot.lane.b32.xlu1 %v855_v11, %s750_s18  ;;  %274 = vrot.lane.b32.xlu0 %v271_v12, %s749_s17 }
  0x2e   : > { %295 = vrot.lane.b32.xlu0 %v290_v14, %s750_s18  ;;  %291 = vrot.lane.b32.xlu1 %v289_v15, %s750_s18 }
  0x32   : > { %303 = vrot.lane.b32.xlu0 %v270_v10, %s751_s19  ;;  %305 = vrot.lane.b32.xlu1 %v289_v15, %s751_s19 }
  0x36   : > { %301 = vrot.lane.b32.xlu0 %v300_v16, %s751_s19  ;;  %312 = vrot.lane.b32.xlu1 %v262_v17, %s752_s20 }
  0x3a   : > { %314 = vrot.lane.b32.xlu0 %v288_v13, %s752_s20  ;;  %321 = vrot.lane.b32.xlu1 %v271_v12, %s753_s26 }
  0x3e   : > { %323 = vrot.lane.b32.xlu0 %v855_v11, %s753_s26  ;;  %310 = vrot.lane.b32.xlu1 %v855_v11, %s752_s20 }
  0x42   : > { %319 = vrot.lane.b32.xlu0 %v270_v10, %s753_s26  ;;  %330 = vrot.lane.b32.xlu1 %v855_v11, %s754_s28 }
  0x46   : > { %332 = vrot.lane.b32.xlu0 %v290_v14, %s754_s28  ;;  %328 = vrot.lane.b32.xlu1 %v289_v15, %s754_s28 }
  0x4a   : > { %339 = vrot.lane.b32.xlu0 %v270_v10, %s756_s29  ;;  %341 = vrot.lane.b32.xlu1 %v289_v15, %s756_s29  ;;  %v443_v10 = vand.u32 127, %v258_v2 }
  0x4e   : > { %337 = vrot.lane.b32.xlu0 %v300_v16, %s756_s29  ;;  %346 = vrot.lane.b32.xlu1 %v855_v11, %s757_s11 }
  0x52   : > { %348 = vrot.lane.b32.xlu0 %v262_v17, %s757_s11  ;;  %350 = vrot.lane.b32.xlu1 %v288_v13, %s757_s11  ;;  %v449_v13 = vand.u32 15, %v443_v10 }
  0x54   : > { %vm469_vm15 = vcmp.lt.s32.totalorder %v449_v13, 14 }
  0x98   : > { %v273_v19 = vpop.permute.xlu1 %272  ;;  %v277_v20 = vpop.permute.xlu0 %276 }
  0x9c   : > { %v294_v21 = vpop.permute.xlu1 %293  ;;  %v275_v22 = vpop.permute.xlu0 %274 }
  0x9d   : > { %v280_v25 = vsel %vm278_vm1, %v275_v22, %v277_v20  ;;  %v279_v30 = vsel %vm278_vm1, %v273_v19, %v275_v22  ;;  %vm495_vm1 = vcmask 7168  }
  0x9e   : > { %v361_v27 = vsel %vm355_vm3, %v262_v17, %v280_v25  ;;  %v358_v35 = vsel %vm355_vm3, %v855_v11, %v279_v30  ;;  %v444_v11 = vadd.s32 128, %v443_v10 }
  0xa0   : > { %v296_v23 = vpop.permute.xlu0 %295  ;;  %v292_v24 = vpop.permute.xlu1 %291  ;;  %v456_v12 = vand.u32 15, %v444_v11  ;;  %vm472_vm14 = vcmp.lt.s32.totalorder %v444_v11, 224 }
  0xa1   : > { %v299_v26 = vsel %vm297_vm2, %v294_v21, %v296_v23  ;;  %v298_v33 = vsel %vm297_vm2, %v292_v24, %v294_v21  ;;  %v490_v24 = vld [vmem:[#allocation2] sm:$0xff] }
  0xa2   : > { %v366_v32 = vsel %vm362_vm5, %v361_v27, %v299_v26  ;;  %v364_v39 = vsel %vm362_vm5, %v358_v35, %v298_v33  ;;  %vm470_vm13 = vcmp.lt.s32.totalorder %v456_v12, 14  ;;  %v497_v26 = vld [vmem:[#allocation3] sm:$0xff] }
  0xa3   : > { %vm474_vm0 = vmand %vm470_vm13, %vm472_vm14 }
  0xa4   : > { %v304_v28 = vpop.permute.xlu0 %303  ;;  %v306_v29 = vpop.permute.xlu1 %305 }
  0xa5   : > { %v309_v31 = vsel %vm307_vm4, %v304_v28, %v306_v29 }
  0xa6   : > { %v372_v34 = vsel %vm367_vm6, %v366_v32, %v309_v31 }
  0xa7   : > { %401 = vmatprep.subr.bf16.mxu0 %v372_v34 }
  0xa8   : > { %v302_v36 = vpop.permute.xlu0 %301  ;;  %v313_v37 = vpop.permute.xlu1 %312 }
  0xa9   : > { %v308_v38 = vsel %vm307_vm4, %v302_v36, %v304_v28 }
  0xaa   : > { %v369_v40 = vsel %vm367_vm6, %v364_v39, %v308_v38 }
  0xab   : > { %402 = vmatpush1.bf16.msra.mxu0 %v369_v40  ;;  %v520_v40 = vld [vmem:[%s952_s3] sm:$0xff] (!%p620_p12) }
  0xac   : > { %v315_v41 = vpop.permute.xlu0 %314  ;;  %v322_v42 = vpop.permute.xlu1 %321 }
  0xad   : > { %v318_v51 = vsel %vm316_vm9, %v313_v37, %v315_v41 }
  0xb0   : > { %v324_v43 = vpop.permute.xlu0 %323  ;;  %v311_v44 = vpop.permute.xlu1 %310 }
  0xb1   : > { %v327_v49 = vsel %vm325_vm7, %v322_v42, %v324_v43  ;;  %v317_v60 = vsel %vm316_vm9, %v311_v44, %v313_v37  ;;  %v515_v37 = vld [vmem:[%s951_s2] sm:$0xff] (!%p620_p12) }
  0xb2   : > { %v379_v52 = vsel %vm355_vm3, %v318_v51, %v327_v49 }
  0xb4   : > { %v320_v45 = vpop.permute.xlu0 %319  ;;  %v331_v46 = vpop.permute.xlu1 %330 }
  0xb5   : > { %v326_v55 = vsel %vm325_vm7, %v320_v45, %v322_v42 }
  0xb6   : > { %v376_v61 = vsel %vm355_vm3, %v317_v60, %v326_v55 }
  0xb8   : > { %v333_v47 = vpop.permute.xlu0 %332  ;;  %v329_v48 = vpop.permute.xlu1 %328 }
  0xb9   : > { %v336_v50 = vsel %vm334_vm8, %v331_v46, %v333_v47  ;;  %v335_v58 = vsel %vm334_vm8, %v329_v48, %v331_v46 }
  0xba   : > { %v383_v57 = vsel %vm362_vm5, %v379_v52, %v336_v50  ;;  %v381_v1 = vsel %vm362_vm5, %v376_v61, %v335_v58 }
  0xbc   : > { %v340_v53 = vpop.permute.xlu0 %339  ;;  %v342_v54 = vpop.permute.xlu1 %341 }
  0xbd   : > { %v345_v56 = vsel %vm343_vm10, %v340_v53, %v342_v54 }
  0xbe   : > { %v388_v59 = vsel %vm367_vm6, %v383_v57, %v345_v56 }
  0xbf   : > { %403 = vmatprep.subr.bf16.mxu0 %v388_v59 }
  0xc0   : > { %v338_v62 = vpop.permute.xlu0 %337  ;;  %v347_v63 = vpop.permute.xlu1 %346 }
  0xc1   : > { %v344_v0 = vsel %vm343_vm10, %v338_v62, %v340_v53 }
  0xc2   : > { %v385_v3 = vsel %vm367_vm6, %v381_v1, %v344_v0 }
  0xc3   : > { %404 = vmatpush1.bf16.msra.mxu0 %v385_v3 }
  0xc4   : > { %v349_v4 = vpop.permute.xlu0 %348  ;;  %v351_v5 = vpop.permute.xlu1 %350 }
  0xc5   : > { %v353_v6 = vsel %vm352_vm11, %v347_v63, %v349_v4  ;;  %v354_v7 = vsel %vm352_vm11, %v349_v4, %v351_v5 }
  0xc6   : > { %617 = vmatprep.subr.msk.bf16.mxu0 %vm355_vm3, %v354_v7  ;;  %v396_v8 = vsel %vm355_vm3, %v353_v6, 0 }
  0xc7   : > { %406 = vmatpush1.bf16.msra.mxu0 %v396_v8 }
  0xca   : > { %618 = vmatmul.mubr.msk.bf16.vlgmr.msra.gmra.mrb[0].mxu0 %vm391_vm12, %v390_v9 }
 0x19d   : > { %v435_v14 = vpop.f32.mrb[0].mxu0 }
 0x19e   : > { %v479_v15 = vsel %vm469_vm15, %v435_v14, 0.0  ;;  %v437_v16 = vpop.f32.mrb[1].mxu0 }
 0x19f   : > { %v498_v17 = vmul.f32 %v479_v15, %v479_v15  ;;  %v480_v18 = vsel %vm474_vm0, %v437_v16, 0.0  ;;  %v439_v19 = vpop.f32.mrb[2].mxu0 }
 0x1a0   : > { %v626_v20 = vpack.c.bf16 %v480_v18, %v479_v15  ;;  %v499_v21 = vmul.f32 %v480_v18, %v480_v18  ;;  %v440_v22 = vpop.f32.mrb[3].mxu0  ;;  %v491_v23 = vadd.f32 %v480_v18, %v479_v15 }
 0x1a2   : > { %489 = vst [vmem:[%s235_s16] sm:$0xff] %v626_v20  ;;  %492 = vadd.xlane.f32.xlu0 %v491_v23  ;;  %v500_v2 = vadd.f32 %v499_v21, %v498_v17 }
 0x1a4   : > { %501 = vadd.xlane.f32.xlu1 %v500_v2 }
 0x22e   : > { %508 = sbr.rel (%p620_p12) target bundleno = 596 (0x254), region = 44 }
 0x22f   : > { %v493_v25 = vpop.xlane.xlu0 %492 }
 0x230   : > { %v494_v27 = vadd.f32 %v493_v25, %v490_v24 }
 0x231   : > { %v502_v28 = vpop.xlane.xlu1 %501 }
 0x232   : > { %496 = vst.msk [vmem:[#allocation2] sm:$0xff] %vm495_vm1, %v494_v27  ;;  %v503_v29 = vadd.f32 %v502_v28, %v497_v26 }
 0x234   : > { %504 = vst.msk [vmem:[#allocation3] sm:$0xff] %vm495_vm1, %v503_v29 }
 0x239   : > { %v509_v30 = vld [vmem:[#allocation2] sm:$0xff] }
 0x23a   : > { %v510_v32 = vmul.f32 0.0025510204, %v509_v30 }
 0x23b   : > { %v511_v31 = vld [vmem:[#allocation3] sm:$0xff] }
 0x23c   : > { %v512_v33 = vmul.f32 0.0025510204, %v511_v31  ;;  %v513_v34 = vmul.f32 %v510_v32, %v510_v32 }
 0x23e   : > { %v514_v35 = vsub.f32 %v512_v33, %v513_v34 }
 0x240   : > { %v516_v36 = vadd.f32 1e-05, %v514_v35 }
 0x242   : > { %681 = vrsqrt.f32 %v516_v36 }
 0x24c   : > { %v682_v38 = vpop.eup %681 }
 0x24d   : > { %v518_v39 = vmul.f32 %v682_v38, %v515_v37 }
 0x24f   : > { %519 = vst.msk [vmem:[%s954_s5] sm:$0xff] %vm495_vm1, %v518_v39  ;;  %v521_v41 = vmul.f32 %v518_v39, %v510_v32 }
 0x251   : > { %v522_v42 = vsub.f32 %v520_v40, %v521_v41 }
 0x253   : > { %523 = vst.msk [vmem:[%s955_s6] sm:$0xff] %vm495_vm1, %v522_v42 }
 0x254 PF: > { %s627_s29 = sshll.u32 %s815_s25, 7  ;;  %s539_s14 = sshll.u32 %s235_s16, 4  ;;  %s540_s14 = int_to_ptr.vmem [resolvable:$true] %s539_s14 }
 0x255   : > { %s909_s13 = scalar_lea.hbm %s953_s4, %s627_s29  ;;  %s525_s15 = scalar_lea.sflag [#allocation5], %s233_s9 }
 0x256   : > { %s683_s17 = scalar_lea.vmem %s540_s14, 128  ;;  %s758_s18 = smov [#allocation4]  }
 0x257   : > { %p684_p13 = scmp.ne.s32.totalorder %s540_s14, %s683_s17  ;;  %s687_s19 = sshll.u32 %s758_s18, 4  ;;  %s688_s19 = int_to_ptr.vmem [resolvable:$false] %s687_s19 }
 0x258   : > { %s689_s20 = scalar_lea.vmem %s688_s19, 256  ;;  %p690_p2 = scmp.lt.s32.totalorder %s540_s14, %s688_s19 }
 0x259   : > { %p685_p0 = pnand %p684_p13, %p832_p5  ;;  %p691_p3 = scmp.lt.s32.totalorder %s689_s20, %s683_s17 }
 0x25b   : > { %p686_p1 = pneg %p685_p0  ;;  %p692_p4 = por %p691_p3, %p690_p2 }
 0x25d   : > { %p693_p7 = pnand %p692_p4, %p686_p1 }
 0x25f   : > { %696 = shalt.err (!%p693_p7)
}
 0x260   : > { %s697_s25 = scalar_lea.hbm %s909_s13, 128  ;;  %s701_s16 = scalar_lea.hbm %s953_s4, 256 }
 0x261   : > { %p698_p8 = scmp.ne.s32.totalorder %s909_s13, %s697_s25  ;;  %p702_p11 = scmp.lt.u32.totalorder %s909_s13, %s953_s4 }
 0x262   : > { %p703_p12 = scmp.lt.u32.totalorder %s701_s16, %s697_s25  ;;  %p705_p0 = scmp.lt.u32.totalorder %s697_s25, %s909_s13 }
 0x263   : > { %p699_p9 = pnand %p698_p8, %p832_p5 }
 0x264   : > { %p704_p13 = por %p703_p12, %p702_p11 }
 0x265   : > { %p700_p10 = pneg %p699_p9 }
 0x266   : > { %p706_p1 = por %p705_p0, %p704_p13 }
 0x268   : > { %p707_p2 = pnand %p706_p1, %p700_p10 }
 0x26a   : > { %710 = shalt.err (!%p707_p2)
}
 0x26b   : > { %629 = dma.vmem_to_hbm [thread:$0]  (%p832_p5), %s540_s14, 128, %s909_s13, %s525_s15  }
 0x26c PF: > { %p635_p3 = scmp.ge.s32.totalorder %s745_s24, 2  ;;  %s563_s29 = sand.u32 1, %s733_s21  }
 0x26d   : > { %s564_s11 = scalar_lea.sflag [#allocation5], %s563_s29 }
 0x26e   : > { %p632_p4 = pnand %p635_p3, %p836_p6 }
 0x270   : > { %728 = dma.done.wait (!%p632_p4), %s564_s11, 128  }
 0x271   : > { %730 = vsyncadd (!%p632_p4), %s564_s11, 4294967168  ;;  %p17_p7 = scmp.ge.s32.totalorder %s819_s27, 4   ;;  %s958_s21 = smov %s737_s22 }
 0x272   : > { %s959_s22 = smov %s741_s23  ;;  %s960_s23 = smov %s830_s30 }
 0x273   : > { %s961_s24 = smov %s819_s27  ;;  %19 = sbr.rel (!%p17_p7) target bundleno = 3 (0x3), region = 95 }
 0x27a   :  { %569 = vsyncpa [#allocation5], 1 }
 0x27b   :  { %571 = vsyncpa [#allocation5 + $0x1], 1 }

</bundles_post_ra>
